<compile_context>
chip_gen: v7x
topology: tpu7x:2x2x1
jax: 0.10.0
libtpu: 0.0.40
codegen_flags: <defaults>
</compile_context>

<pallas_src>
import math

import jax
import jax.numpy as jnp
from jax.experimental import pallas as pl
from jax.experimental.pallas import tpu as pltpu


def _round_up(n, m):
    return ((n + m - 1) // m) * m


def _padded_tile_bytes(shape, dtype):
    """VMEM footprint of one buffer of a (rows, cols) block after Mosaic's
    sublane/lane padding: f32 -> (8,128), bf16 -> (16,128), int8/fp8 -> (32,128)."""
    r, c = shape
    dt = jnp.dtype(dtype)
    sub = max(8, 32 // dt.itemsize)
    return _round_up(max(int(r), 1), sub) * _round_up(max(int(c), 1), 128) * dt.itemsize


def _subclustering_kernel(x_ref, w1_ref, w2_ref, bp_ref, o_ref):
    """One batch tile: relu(x @ w1 + b1) @ w2 + b2, f32 accumulation."""
    out_dim = o_ref.shape[-1]
    cdt = w1_ref.dtype
    bp = bp_ref[...]                        # (2, H1) f32 packed biases
    b1 = bp[0:1, :]                         # (1, H1)
    b2 = bp[1:2, :out_dim]                  # (1, 2K)

    x = x_ref[...].astype(cdt)              # in-VMEM cast; no-op if dtypes match
    h = jnp.dot(x, w1_ref[...], preferred_element_type=jnp.float32) + b1
    h = jnp.maximum(h, 0.0).astype(cdt)
    y = jnp.dot(h, w2_ref[...], preferred_element_type=jnp.float32) + b2
    o_ref[...] = y.astype(o_ref.dtype)


def subclustering_forward(x, params, *, batch_tile=None, compute_dtype=None):
    """x: (..., codes_dim). Returns (..., 2*K) logits in float32.

    x is streamed from HBM untouched (no wrapper-side cast/pad passes). For
    halved x HBM traffic hand in a bfloat16 x from the producer; compute_dtype
    only controls the (tiny) weight cast + the in-kernel tile cast.
    """
    w1, b1, w2, b2 = params
    D, H1 = w1.shape            # codes_dim, hidden_dim*K
    O = w2.shape[1]             # 2*K
    assert O <= H1

    x2d = x.reshape(-1, D)
    B = x2d.shape[0]

    cdt = jnp.dtype(compute_dtype) if compute_dtype is not None else x2d.dtype
    w1k = w1.astype(cdt)        # tiny arrays: the only wrapper-side casts
    w2k = w2.astype(cdt)

    # Pack the two tiny bias vectors into one resident (2, H1) f32 tile.
    bpack = jnp.zeros((2, H1), jnp.float32)
    bpack = bpack.at[0, :].set(b1.reshape(-1).astype(jnp.float32))
    bpack = bpack.at[1, :O].set(b2.reshape(-1).astype(jnp.float32))

    # Batch tile: multiple of 16 sublanes (safe for f32 and bf16).  Cap at
    # ceil(B/2) so the "parallel" batch grid has >= 2 steps (v7x 2 TCs).
    if batch_tile is None:
        batch_tile = 4096
    TB = min(int(batch_tile), _round_up(B, 16))
    if B > 16:
        TB = min(TB, _round_up(pl.cdiv(B, 2), 16))
    TB = max(_round_up(TB, 16), 16)
    grid = (pl.cdiv(B, TB),)

    # Scoped-VMEM limit from the PADDED block shapes (assume double-buffered
    # everywhere for safety) plus headroom.
    vmem_bytes = (2 * _padded_tile_bytes((TB, D), x2d.dtype)
                  + 2 * _padded_tile_bytes((D, H1), cdt)
                  + 2 * _padded_tile_bytes((H1, O), cdt)
                  + 2 * _padded_tile_bytes((2, H1), jnp.float32)
                  + 2 * _padded_tile_bytes((TB, O), jnp.float32)
                  + (4 << 20))
    vmem_bytes = int(min(vmem_bytes, 48 << 20))

    def build(single_buffer_weights):
        resident_kw = {}
        if single_buffer_weights and hasattr(pl, "Buffered"):
            resident_kw = dict(pipeline_mode=pl.Buffered(1))
        in_specs = [
            pl.BlockSpec((TB, D), lambda i: (i, 0)),                   # x: batch-tiled
            pl.BlockSpec((D, H1), lambda i: (0, 0), **resident_kw),    # w1: resident
            pl.BlockSpec((H1, O), lambda i: (0, 0), **resident_kw),    # w2: resident
            pl.BlockSpec((2, H1), lambda i: (0, 0), **resident_kw),    # biases: resident
        ]
        return pl.pallas_call(
            _subclustering_kernel,
            out_shape=jax.ShapeDtypeStruct((B, O), jnp.float32),
            grid=grid,
            in_specs=in_specs,
            out_specs=pl.BlockSpec((TB, O), lambda i: (i, 0)),
            compiler_params=pltpu.CompilerParams(
                dimension_semantics=("parallel",),
                vmem_limit_bytes=vmem_bytes),
        )

    try:
        out = build(True)(x2d, w1k, w2k, bpack)
    except Exception:
        # Installed Pallas rejected single-buffered resident blocks; fall back.
        out = build(False)(x2d, w1k, w2k, bpack)

    return out.reshape(x.shape[:-1] + (O,))


def init_params(key, codes_dim, hidden_dim, k):
    """PyTorch nn.Linear-style init (U(-1/sqrt(fan_in), 1/sqrt(fan_in))).
    Weights stored transposed as (in, out); biases as (1, out).
    Applies Subclustering_net's block-diagonal mask to fc2's weights,
    exactly as the module does at construction."""
    H1, O = hidden_dim * k, 2 * k

    def linear(key, fan_in, fan_out):
        kw, kb = jax.random.split(key)
        bound = 1.0 / math.sqrt(fan_in)
        w = jax.random.uniform(kw, (fan_in, fan_out), jnp.float32, -bound, bound)
        b = jax.random.uniform(kb, (1, fan_out), jnp.float32, -bound, bound)
        return w, b

    k1, k2 = jax.random.split(key)
    w1, b1 = linear(k1, codes_dim, H1)
    w2, b2 = linear(k2, H1, O)

    mask = jnp.zeros((H1, O), jnp.float32)
    for i in range(k):
        mask = mask.at[hidden_dim * i:hidden_dim * (i + 1),
                       2 * i:2 * (i + 1)].set(1.0)
    w2 = w2 * mask
    return (w1, b1, w2, b2)


def _reference(x, params):
    w1, b1, w2, b2 = params
    h = jax.nn.relu(x @ w1 + b1)
    return h @ w2 + b2


if __name__ == "__main__":
    # Small shapes consistent with the module: codes_dim=128, hidden_dim=32,
    # K = hparams.init_k = 5  ->  class_fc1: 128->160, class_fc2: 160->10.
    CODES_DIM, HIDDEN_DIM, K = 128, 32, 5
    B = 48

    key = jax.random.PRNGKey(0)
    kx, kp = jax.random.split(key)
    x = jax.random.normal(kx, (B, CODES_DIM), jnp.float32)
    params = init_params(kp, CODES_DIM, HIDDEN_DIM, K)

    ref = _reference(x, params)

    # f32, small tile: exercises a multi-step batch grid (grid=(3,)).
    out_small = subclustering_forward(x, params, batch_tile=16)
    out_small = jax.block_until_ready(out_small)
    assert out_small.shape == (B, 2 * K)
    assert jnp.allclose(out_small, ref, atol=1e-4, rtol=1e-4)

    # f32, default tile: TB capped at ceil(B/2) -> grid=(2,) with a ragged
    # (masked) last block; no wrapper-side pad/cast passes over x.
    out_def = subclustering_forward(x, params)
    out_def = jax.block_until_ready(out_def)
    assert jnp.allclose(out_def, ref, atol=1e-4, rtol=1e-4)

    # bf16 x straight from the "producer" (halved x HBM traffic, f32 accum).
    out_bf16 = subclustering_forward(x.astype(jnp.bfloat16), params)
    out_bf16 = jax.block_until_ready(out_bf16)
    assert jnp.allclose(out_bf16, ref, atol=5e-2, rtol=5e-2)

    print("KERNEL_OK")
</pallas_src>

<mosaic_0001>
module attributes {stable_mosaic.version = 11 : i64} {
  func.func @_subclustering_kernel(%arg0: i32, %arg1: memref<16x128xf32, #tpu.memory_space<vmem>>, %arg2: memref<128x160xf32, #tpu.memory_space<vmem>>, %arg3: memref<160x10xf32, #tpu.memory_space<vmem>>, %arg4: memref<2x160xf32, #tpu.memory_space<vmem>>, %arg5: memref<16x10xf32, #tpu.memory_space<vmem>>) attributes {dimension_semantics = [#tpu.dimension_semantics<parallel>], iteration_bounds = array<i64: 3>, scalar_prefetch = 0 : i64, scratch_operands = 0 : i64, tpu.core_type = #tpu.core_type<tc>, window_params = [{transform_indices = @transform_0, window_bounds = array<i64: 16, 128>}, {pipeline_mode = #tpu.pipeline_mode<synchronous>, transform_indices = @transform_1, window_bounds = array<i64: 128, 160>}, {pipeline_mode = #tpu.pipeline_mode<synchronous>, transform_indices = @transform_2, window_bounds = array<i64: 160, 10>}, {pipeline_mode = #tpu.pipeline_mode<synchronous>, transform_indices = @transform_3, window_bounds = array<i64: 2, 160>}, {transform_indices = @transform_4, window_bounds = array<i64: 16, 10>}]} {
    %c0 = arith.constant 0 : index
    %c0_0 = arith.constant 0 : index
    %0 = vector.load %arg4[%c0, %c0_0] : memref<2x160xf32, #tpu.memory_space<vmem>>, vector<2x160xf32>
    %1 = vector.extract_strided_slice %0 {offsets = [0, 0], sizes = [1, 160], strides = [1, 1]} : vector<2x160xf32> to vector<1x160xf32>
    %2 = vector.extract_strided_slice %0 {offsets = [1, 0], sizes = [1, 10], strides = [1, 1]} : vector<2x160xf32> to vector<1x10xf32>
    %c0_1 = arith.constant 0 : index
    %c0_2 = arith.constant 0 : index
    %3 = vector.load %arg1[%c0_1, %c0_2] : memref<16x128xf32, #tpu.memory_space<vmem>>, vector<16x128xf32>
    %c0_3 = arith.constant 0 : index
    %c0_4 = arith.constant 0 : index
    %4 = vector.load %arg2[%c0_3, %c0_4] : memref<128x160xf32, #tpu.memory_space<vmem>>, vector<128x160xf32>
    %cst = arith.constant dense<0.000000e+00> : vector<16x160xf32>
    %5 = tpu.matmul %3, %4, %cst {dimension_numbers = #tpu.dot_dimension_numbers<[1], [0], [0], [1], [0, 0, 1, 1], [], []>} : vector<16x128xf32>, vector<128x160xf32>, vector<16x160xf32> -> vector<16x160xf32>
    %6 = vector.broadcast %1 : vector<1x160xf32> to vector<16x160xf32>
    %7 = arith.addf %5, %6 : vector<16x160xf32>
    %cst_5 = arith.constant 0.000000e+00 : f32
    %8 = vector.broadcast %cst_5 : f32 to vector<16x160xf32>
    %9 = arith.maximumf %7, %8 : vector<16x160xf32>
    %c0_6 = arith.constant 0 : index
    %c0_7 = arith.constant 0 : index
    %10 = vector.load %arg3[%c0_6, %c0_7] : memref<160x10xf32, #tpu.memory_space<vmem>>, vector<160x10xf32>
    %cst_8 = arith.constant dense<0.000000e+00> : vector<16x10xf32>
    %11 = tpu.matmul %9, %10, %cst_8 {dimension_numbers = #tpu.dot_dimension_numbers<[1], [0], [0], [1], [0, 0, 1, 1], [], []>} : vector<16x160xf32>, vector<160x10xf32>, vector<16x10xf32> -> vector<16x10xf32>
    %12 = vector.broadcast %2 : vector<1x10xf32> to vector<16x10xf32>
    %13 = arith.addf %11, %12 : vector<16x10xf32>
    %c0_9 = arith.constant 0 : index
    %c0_10 = arith.constant 0 : index
    %14 = vector.load %arg5[%c0_9, %c0_10] : memref<16x10xf32, #tpu.memory_space<vmem>>, vector<16x10xf32>
    tpu.vector_store %arg5[%c0_9, %c0_10], %13 {strides = array<i32>} : memref<16x10xf32, #tpu.memory_space<vmem>>, vector<16x10xf32>,
    return
  }
  func.func @transform_0(%arg0: i32) -> (i32, i32) {
    %c0_i32 = arith.constant 0 : i32
    %c0_i32_0 = arith.constant 0 : i32
    return %arg0, %c0_i32 : i32, i32
  }
  func.func @transform_1(%arg0: i32) -> (i32, i32) {
    %c0_i32 = arith.constant 0 : i32
    %c0_i32_0 = arith.constant 0 : i32
    %c0_i32_1 = arith.constant 0 : i32
    return %c0_i32, %c0_i32_0 : i32, i32
  }
  func.func @transform_2(%arg0: i32) -> (i32, i32) {
    %c0_i32 = arith.constant 0 : i32
    %c0_i32_0 = arith.constant 0 : i32
    %c0_i32_1 = arith.constant 0 : i32
    return %c0_i32, %c0_i32_0 : i32, i32
  }
  func.func @transform_3(%arg0: i32) -> (i32, i32) {
    %c0_i32 = arith.constant 0 : i32
    %c0_i32_0 = arith.constant 0 : i32
    %c0_i32_1 = arith.constant 0 : i32
    return %c0_i32, %c0_i32_0 : i32, i32
  }
  func.func @transform_4(%arg0: i32) -> (i32, i32) {
    %c0_i32 = arith.constant 0 : i32
    %c0_i32_0 = arith.constant 0 : i32
    return %arg0, %c0_i32 : i32, i32
  }
}

module attributes {stable_mosaic.version = 11 : i64} {
  func.func @_subclustering_kernel(%arg0: i32, %arg1: memref<16x128xf32, #tpu.memory_space<vmem>>, %arg2: memref<128x160xf32, #tpu.memory_space<vmem>>, %arg3: memref<160x10xf32, #tpu.memory_space<vmem>>, %arg4: memref<2x160xf32, #tpu.memory_space<vmem>>, %arg5: memref<16x10xf32, #tpu.memory_space<vmem>>) attributes {dimension_semantics = [#tpu.dimension_semantics<parallel>], iteration_bounds = array<i64: 3>, scalar_prefetch = 0 : i64, scratch_operands = 0 : i64, tpu.core_type = #tpu.core_type<tc>, window_params = [{transform_indices = @transform_0, window_bounds = array<i64: 16, 128>}, {pipeline_mode = #tpu.pipeline_mode<synchronous>, transform_indices = @transform_1, window_bounds = array<i64: 128, 160>}, {pipeline_mode = #tpu.pipeline_mode<synchronous>, transform_indices = @transform_2, window_bounds = array<i64: 160, 10>}, {pipeline_mode = #tpu.pipeline_mode<synchronous>, transform_indices = @transform_3, window_bounds = array<i64: 2, 160>}, {transform_indices = @transform_4, window_bounds = array<i64: 16, 10>}]} {
    %c0 = arith.constant 0 : index
    %c0_0 = arith.constant 0 : index
    %0 = vector.load %arg4[%c0, %c0_0] : memref<2x160xf32, #tpu.memory_space<vmem>>, vector<2x160xf32>
    %1 = vector.extract_strided_slice %0 {offsets = [0, 0], sizes = [1, 160], strides = [1, 1]} : vector<2x160xf32> to vector<1x160xf32>
    %2 = vector.extract_strided_slice %0 {offsets = [1, 0], sizes = [1, 10], strides = [1, 1]} : vector<2x160xf32> to vector<1x10xf32>
    %c0_1 = arith.constant 0 : index
    %c0_2 = arith.constant 0 : index
    %3 = vector.load %arg1[%c0_1, %c0_2] : memref<16x128xf32, #tpu.memory_space<vmem>>, vector<16x128xf32>
    %c0_3 = arith.constant 0 : index
    %c0_4 = arith.constant 0 : index
    %4 = vector.load %arg2[%c0_3, %c0_4] : memref<128x160xf32, #tpu.memory_space<vmem>>, vector<128x160xf32>
    %cst = arith.constant dense<0.000000e+00> : vector<16x160xf32>
    %5 = tpu.matmul %3, %4, %cst {dimension_numbers = #tpu.dot_dimension_numbers<[1], [0], [0], [1], [0, 0, 1, 1], [], []>} : vector<16x128xf32>, vector<128x160xf32>, vector<16x160xf32> -> vector<16x160xf32>
    %6 = vector.broadcast %1 : vector<1x160xf32> to vector<16x160xf32>
    %7 = arith.addf %5, %6 : vector<16x160xf32>
    %cst_5 = arith.constant 0.000000e+00 : f32
    %8 = vector.broadcast %cst_5 : f32 to vector<16x160xf32>
    %9 = arith.maximumf %7, %8 : vector<16x160xf32>
    %c0_6 = arith.constant 0 : index
    %c0_7 = arith.constant 0 : index
    %10 = vector.load %arg3[%c0_6, %c0_7] : memref<160x10xf32, #tpu.memory_space<vmem>>, vector<160x10xf32>
    %cst_8 = arith.constant dense<0.000000e+00> : vector<16x10xf32>
    %11 = tpu.matmul %9, %10, %cst_8 {dimension_numbers = #tpu.dot_dimension_numbers<[1], [0], [0], [1], [0, 0, 1, 1], [], []>} : vector<16x160xf32>, vector<160x10xf32>, vector<16x10xf32> -> vector<16x10xf32>
    %12 = vector.broadcast %2 : vector<1x10xf32> to vector<16x10xf32>
    %13 = arith.addf %11, %12 : vector<16x10xf32>
    %c0_9 = arith.constant 0 : index
    %c0_10 = arith.constant 0 : index
    %14 = vector.load %arg5[%c0_9, %c0_10] : memref<16x10xf32, #tpu.memory_space<vmem>>, vector<16x10xf32>
    tpu.vector_store %arg5[%c0_9, %c0_10], %13 {strides = array<i32>} : memref<16x10xf32, #tpu.memory_space<vmem>>, vector<16x10xf32>,
    return
  }
  func.func @transform_0(%arg0: i32) -> (i32, i32) {
    %c0_i32 = arith.constant 0 : i32
    %c0_i32_0 = arith.constant 0 : i32
    return %arg0, %c0_i32 : i32, i32
  }
  func.func @transform_1(%arg0: i32) -> (i32, i32) {
    %c0_i32 = arith.constant 0 : i32
    %c0_i32_0 = arith.constant 0 : i32
    %c0_i32_1 = arith.constant 0 : i32
    return %c0_i32, %c0_i32_0 : i32, i32
  }
  func.func @transform_2(%arg0: i32) -> (i32, i32) {
    %c0_i32 = arith.constant 0 : i32
    %c0_i32_0 = arith.constant 0 : i32
    %c0_i32_1 = arith.constant 0 : i32
    return %c0_i32, %c0_i32_0 : i32, i32
  }
  func.func @transform_3(%arg0: i32) -> (i32, i32) {
    %c0_i32 = arith.constant 0 : i32
    %c0_i32_0 = arith.constant 0 : i32
    %c0_i32_1 = arith.constant 0 : i32
    return %c0_i32, %c0_i32_0 : i32, i32
  }
  func.func @transform_4(%arg0: i32) -> (i32, i32) {
    %c0_i32 = arith.constant 0 : i32
    %c0_i32_0 = arith.constant 0 : i32
    return %arg0, %c0_i32 : i32, i32
  }
}

</mosaic_0001>

<bundles_post_ra>
// kernel: tpu_custom_call.1
= control target key start
LH: loop header
LB: loop body
LE: loop exit
PB: predicated region body
PF: predicated region fallthrough
CT: control target
= control target key end

     0   :  { %s621_s15 = smov 0   ;;  %s819_s0 = inlined_call_operand.vmem [shape: f32[48,128], index: 0, kind: input, shape index: {}]   ;;  %s820_s1 = inlined_call_operand.vmem [shape: f32[128,160], index: 1, kind: input, shape index: {}]   ;;  %s821_s2 = inlined_call_operand.vmem [shape: f32[160,10], index: 2, kind: input, shape index: {}]   ;;  %s822_s3 = inlined_call_operand.vmem [shape: f32[2,160], index: 3, kind: input, shape index: {}]   ;;  %s823_s4 = inlined_call_operand.vmem [shape: f32[48,10], index: 4, kind: output, shape index: {}]  }
   0x1 LB: > { %s501_s16 = sadd.s32 4294967295, %s592_s15   ;;  %p505_p0 = scmp.ge.s32.totalorder %s592_s15, 1  ;;  %s592_s15 = sphi %s621_s15, %s14_s15  }
   0x2   : > { %p163_p1 = scmp.lt.s32.totalorder %s592_s15, 4 }
   0x4   : > { %p164_p2 = pnand %p505_p0, %p163_p1 }
   0x5   : > { %v205_v0 = vld [vmem:[%s820_s1 + $0x8] sm:$0xff] (!%p164_p2)  ;;  %v207_v1 = vld [vmem:[%s820_s1 + $0x18] sm:$0xff] (!%p164_p2)  ;;  %v204_v2 = vld [vmem:[%s820_s1] sm:$0xff] (!%p164_p2)  ;;  %v594_v7 = vmov (!%p164_p2), 0.0   ;;  %v595_v8 = vmov (!%p164_p2), 0.0|0.0   ;;  %s506_s21 = sshll.u32 (!%p164_p2), %s501_s16, 1 }
   0x6   : > { %167 = sbr.rel (%p164_p2) target bundleno = 477 (0x1dd), region = 36  ;;  %v514_v3 = vpack.c.bf16 (!%p164_p2), %v207_v1, %v205_v0  ;;  %v206_v4 = vld [vmem:[%s820_s1 + $0x10] sm:$0xff] (!%p164_p2)  ;;  %v209_v5 = vld [vmem:[%s820_s1 + $0x28] sm:$0xff] (!%p164_p2)  ;;  %v211_v6 = vld [vmem:[%s820_s1 + $0x38] sm:$0xff] (!%p164_p2)  ;;  %319 = vmatprep.mubr.f32.mxu0 (!%p164_p2), %v594_v7  ;;  %546 = vmatprep.subr.bf16.mxu1 (!%p164_p2), %v595_v8  ;;  %p190_p3 = scmp.lt.s32.totalorder (!%p164_p2), %s506_s21, 5  ;;  %vm360_vm0 = vcmask (!%p164_p2), 261120  }
   0x7   : > { %v516_v9 = vpack.c.bf16 (!%p164_p2), %v206_v4, %v204_v2  ;;  %v518_v10 = vpack.c.bf16 (!%p164_p2), %v211_v6, %v209_v5  ;;  %v208_v11 = vld [vmem:[%s820_s1 + $0x20] sm:$0xff] (!%p164_p2)  ;;  %v210_v12 = vld [vmem:[%s820_s1 + $0x30] sm:$0xff] (!%p164_p2)  ;;  %v213_v13 = vld [vmem:[%s820_s1 + $0x48] sm:$0xff] (!%p164_p2)  ;;  %vm442_vm1 = vcmask (!%p164_p2), 80896  }
   0x8   : > { %515 = vmatprep.subr.bf16.mxu0 (!%p164_p2), %v514_v3  ;;  %v215_v14 = vld [vmem:[%s820_s1 + $0x58] sm:$0xff] (!%p164_p2)  ;;  %v520_v15 = vpack.c.bf16 (!%p164_p2), %v210_v12, %v208_v11  ;;  %v212_v17 = vld [vmem:[%s820_s1 + $0x40] sm:$0xff] (!%p164_p2)  ;;  %v214_v18 = vld [vmem:[%s820_s1 + $0x50] sm:$0xff] (!%p164_p2) }
   0x9   : > { %517 = vmatpush1.bf16.msra.mxu0 (!%p164_p2), %v516_v9  ;;  %v522_v16 = vpack.c.bf16 (!%p164_p2), %v215_v14, %v213_v13  ;;  %v217_v19 = vld [vmem:[%s820_s1 + $0x68] sm:$0xff] (!%p164_p2)  ;;  %v219_v20 = vld [vmem:[%s820_s1 + $0x78] sm:$0xff] (!%p164_p2)  ;;  %v524_v21 = vpack.c.bf16 (!%p164_p2), %v214_v18, %v212_v17  ;;  %v216_v23 = vld [vmem:[%s820_s1 + $0x60] sm:$0xff] (!%p164_p2) }
   0xa   : > { %519 = vmatprep.subr.bf16.mxu0 (!%p164_p2), %v518_v10  ;;  %v526_v22 = vpack.c.bf16 (!%p164_p2), %v219_v20, %v217_v19  ;;  %v218_v24 = vld [vmem:[%s820_s1 + $0x70] sm:$0xff] (!%p164_p2)  ;;  %v221_v25 = vld [vmem:[%s820_s1 + $0x88] sm:$0xff] (!%p164_p2)  ;;  %v223_v26 = vld [vmem:[%s820_s1 + $0x98] sm:$0xff] (!%p164_p2)  ;;  %v237_v19 = vlaneseq (!%p164_p2) }
   0xb   : > { %v336_v27 = vld [vmem:[%s821_s2] sm:$0xff] (!%p164_p2)  ;;  %v337_v28 = vld [vmem:[%s821_s2 + $0x8] sm:$0xff] (!%p164_p2)  ;;  %v528_v29 = vpack.c.bf16 (!%p164_p2), %v218_v24, %v216_v23  ;;  %v338_v31 = vld [vmem:[%s821_s2 + $0x10] sm:$0xff] (!%p164_p2)  ;;  %v530_v33 = vpack.c.bf16 (!%p164_p2), %v223_v26, %v221_v25 }
   0xc   : > { %v547_v30 = vpack.c.bf16 (!%p164_p2), %v337_v28, %v336_v27  ;;  %v339_v32 = vld [vmem:[%s821_s2 + $0x18] sm:$0xff] (!%p164_p2)  ;;  %v220_v34 = vld [vmem:[%s820_s1 + $0x80] sm:$0xff] (!%p164_p2)  ;;  %v222_v35 = vld [vmem:[%s820_s1 + $0x90] sm:$0xff] (!%p164_p2)  ;;  %v238_v20 = vshrl.u32 (!%p164_p2), %v237_v19, 7 }
   0xd   : > { %521 = vmatpush1.bf16.msra.mxu0 %v520_v15  ;;  %v225_v36 = vld [vmem:[%s820_s1 + $0xa8] sm:$0xff]  ;;  %v227_v37 = vld [vmem:[%s820_s1 + $0xb8] sm:$0xff]  ;;  %v550_v38 = vpack.c.bf16 %v339_v32, %v338_v31  ;;  %v340_v39 = vld [vmem:[%s821_s2 + $0x20] sm:$0xff]  ;;  %v532_v41 = vpack.c.bf16 %v222_v35, %v220_v34  ;;  %s825_s21 = smov (!%p190_p3, %s506_s21), 5 }
   0xe   : > { %523 = vmatprep.subr.bf16.mxu0 %v522_v16  ;;  %548 = vmatpush1.bf16.msra.mxu1 %v547_v30  ;;  %v341_v40 = vld [vmem:[%s821_s2 + $0x28] sm:$0xff]  ;;  %v534_v42 = vpack.c.bf16 %v227_v37, %v225_v36  ;;  %v224_v43 = vld [vmem:[%s820_s1 + $0xa0] sm:$0xff]  ;;  %v226_v44 = vld [vmem:[%s820_s1 + $0xb0] sm:$0xff]  ;;  %s507_s29 = sshll.u32 %s825_s21, 3  ;;  %v243_v23 = vsub.s32 2, %v238_v20 }
   0xf   : > { %549 = vmatprep.subr.bf16.mxu1 %v595_v8  ;;  %v229_v45 = vld [vmem:[%s820_s1 + $0xc8] sm:$0xff]  ;;  %v231_v46 = vld [vmem:[%s820_s1 + $0xd8] sm:$0xff]  ;;  %v553_v47 = vpack.c.bf16 %v341_v40, %v340_v39  ;;  %v342_v48 = vld [vmem:[%s821_s2 + $0x30] sm:$0xff]  ;;  %v536_v50 = vpack.c.bf16 %v226_v44, %v224_v43  ;;  %s193_s10 = scalar_lea.vmem %s819_s0, %s507_s29  ;;  %v358_v39 = vsub.s32 1, %v238_v20  ;;  %s199_s8 = scalar_lea.vmem %s823_s4, %s507_s29 }
  0x10   : > { %v343_v49 = vld [vmem:[%s821_s2 + $0x38] sm:$0xff]  ;;  %v538_v51 = vpack.c.bf16 %v231_v46, %v229_v45  ;;  %v228_v52 = vld [vmem:[%s820_s1 + $0xc0] sm:$0xff]  ;;  %v230_v53 = vld [vmem:[%s820_s1 + $0xd0] sm:$0xff] }
  0x11   : > { %525 = vmatpush1.bf16.msra.mxu0 %v524_v21  ;;  %v233_v54 = vld [vmem:[%s820_s1 + $0xe8] sm:$0xff]  ;;  %v235_v55 = vld [vmem:[%s820_s1 + $0xf8] sm:$0xff]  ;;  %v556_v56 = vpack.c.bf16 %v343_v49, %v342_v48  ;;  %v344_v57 = vld [vmem:[%s821_s2 + $0x40] sm:$0xff]  ;;  %v540_v59 = vpack.c.bf16 %v230_v53, %v228_v52  ;;  %v239_v21 = vsub.s32 0, %v238_v20 }
  0x12   : > { %527 = vmatprep.subr.bf16.mxu0 %v526_v22  ;;  %551 = vmatpush1.bf16.msra.mxu1 %v550_v38  ;;  %v345_v58 = vld [vmem:[%s821_s2 + $0x48] sm:$0xff]  ;;  %v542_v60 = vpack.c.bf16 %v235_v55, %v233_v54  ;;  %v232_v61 = vld [vmem:[%s820_s1 + $0xe0] sm:$0xff]  ;;  %v234_v62 = vld [vmem:[%s820_s1 + $0xf0] sm:$0xff] }
  0x13   : > { %552 = vmatprep.subr.bf16.mxu1 %v595_v8  ;;  %v559_v63 = vpack.c.bf16 %v345_v58, %v344_v57  ;;  %v346_v0 = vld [vmem:[%s821_s2 + $0x50] sm:$0xff]  ;;  %v347_v1 = vld [vmem:[%s821_s2 + $0x58] sm:$0xff]  ;;  %v544_v2 = vpack.c.bf16 %v234_v62, %v232_v61  ;;  %v348_v4 = vld [vmem:[%s821_s2 + $0x60] sm:$0xff] }
  0x14   : > { %v562_v3 = vpack.c.bf16 %v347_v1, %v346_v0  ;;  %v349_v5 = vld [vmem:[%s821_s2 + $0x68] sm:$0xff]  ;;  %v202_v6 = vld [vmem:[%s193_s10] sm:$0xff]  ;;  %v350_v10 = vld [vmem:[%s821_s2 + $0x70] sm:$0xff] }
  0x15   : > { %529 = vmatpush1.bf16.msra.mxu0 %v528_v29  ;;  %v565_v9 = vpack.c.bf16 %v349_v5, %v348_v4  ;;  %v351_v11 = vld [vmem:[%s821_s2 + $0x78] sm:$0xff]  ;;  %v203_v12 = vld [vmem:[%s193_s10 + $0x8] sm:$0xff]  ;;  %v352_v14 = vld [vmem:[%s821_s2 + $0x80] sm:$0xff] }
  0x16   : > { %531 = vmatprep.subr.bf16.mxu0 %v530_v33  ;;  %554 = vmatpush1.bf16.msra.mxu1 %v553_v47  ;;  %v568_v13 = vpack.c.bf16 %v351_v11, %v350_v10  ;;  %v353_v15 = vld [vmem:[%s821_s2 + $0x88] sm:$0xff]  ;;  %v355_v17 = vld [vmem:[%s821_s2 + $0x98] sm:$0xff]  ;;  %v201_v22 = vld [vmem:[%s822_s3] sm:$0xf] }
  0x17   : > { %555 = vmatprep.subr.bf16.mxu1 %v595_v8  ;;  %v571_v16 = vpack.c.bf16 %v353_v15, %v352_v14  ;;  %v240_v24 = vrot.slane %v201_v22, %v239_v21  ;;  %v359_v40 = vrot.slane %v201_v22, %v358_v39 }
  0x19   : > { %533 = vmatpush1.bf16.msra.mxu0 %v532_v41  ;;  %v250_v25 = vrot.slane %v240_v24, %v239_v21 }
  0x1a   : > { %535 = vmatprep.subr.bf16.mxu0 %v534_v42  ;;  %557 = vmatpush1.bf16.msra.mxu1 %v556_v56 }
  0x1b   : > { %558 = vmatprep.subr.bf16.mxu1 %v595_v8 }
  0x1d   : > { %537 = vmatpush1.bf16.msra.mxu0 %v536_v50 }
  0x1e   : > { %539 = vmatprep.subr.bf16.mxu0 %v538_v51  ;;  %560 = vmatpush1.bf16.msra.mxu1 %v559_v63 }
  0x1f   : > { %561 = vmatprep.subr.bf16.mxu1 %v595_v8 }
  0x21   : > { %541 = vmatpush1.bf16.msra.mxu0 %v540_v59 }
  0x22   : > { %543 = vmatprep.subr.bf16.mxu0 %v542_v60  ;;  %563 = vmatpush1.bf16.msra.mxu1 %v562_v3 }
  0x23   : > { %564 = vmatprep.subr.bf16.mxu1 %v595_v8 }
  0x25   : > { %545 = vmatpush1.bf16.msra.mxu0 %v544_v2 }
  0x26   : > { %566 = vmatpush1.bf16.msra.mxu1 %v565_v9 }
  0x27   : > { %567 = vmatprep.subr.bf16.mxu1 %v595_v8 }
  0x28   : > { %320 = vmatmul.mubr.f32.vlgmr.msra.gmra.mrb[0].mxu0 %v202_v6 }
  0x29   : > { %325 = vmatprep.mubr.f32.mxu0 %v594_v7  ;;  %v354_v7 = vld [vmem:[%s821_s2 + $0x90] sm:$0xff] }
  0x2a   : > { %569 = vmatpush1.bf16.msra.mxu1 %v568_v13  ;;  %v574_v18 = vpack.c.bf16 %v355_v17, %v354_v7 }
  0x2b   : > { %570 = vmatprep.subr.bf16.mxu1 %v595_v8 }
  0x2c   : > { %326 = vmatmul.mubr.f32.gmra.mrb[2].mxu0 %v203_v12 }
  0x2e   : > { %572 = vmatpush1.bf16.msra.mxu1 %v571_v16 }
  0x2f   : > { %573 = vmatprep.subr.bf16.mxu1 %v595_v8  ;;  %v244_v8 = vrot.slane %v201_v22, %v243_v23 }
  0x31   : > { %v254_v26 = vrot.slane %v244_v8, %v239_v21 }
  0x32   : > { %575 = vmatpush1.bf16.msra.mxu1 %v574_v18 }
  0xfb   : > { %v321_v27 = vpop.f32.mrb[0].mxu0 }
  0xfc   : > { %v322_v28 = vadd.f32 %v321_v27, %v250_v25  ;;  %v323_v29 = vpop.f32.mrb[1].mxu0 }
  0xfd   : > { %v324_v30 = vadd.f32 %v323_v29, %v254_v26 }
  0xfe   : > { %v332_v33 = vmax.f32 %v322_v28, 0.0 }
  0xff   : > { %v333_v31 = vmax.f32 %v324_v30, 0.0  ;;  %v327_v32 = vpop.f32.mrb[2].mxu0 }
 0x100   : > { %v328_v34 = vadd.f32 %v327_v32, %v250_v25  ;;  %v329_v35 = vpop.f32.mrb[3].mxu0 }
 0x101   : > { %v330_v36 = vadd.f32 %v329_v35, %v254_v26  ;;  %510 = vmatprep.mubr.msk.f32.mxu1 %vm360_vm0, %v333_v31 }
 0x102   : > { %432 = vmatmul.mubr.f32.vlgmr.msra.gmra.mrb[0].mxu1 %v332_v33  ;;  %v334_v38 = vmax.f32 %v328_v34, 0.0 }
 0x103   : > { %v335_v37 = vmax.f32 %v330_v36, 0.0 }
 0x105   : > { %511 = vmatprep.mubr.msk.f32.mxu1 %vm360_vm0, %v335_v37 }
 0x106   : > { %437 = vmatmul.mubr.f32.gmra.mrb[2].mxu1 %v334_v38 }
 0x1d5   : > { %v433_v41 = vpop.f32.mrb[0].mxu1 }
 0x1d6   : > { %v434_v42 = vadd.f32 %v433_v41, %v359_v40  ;;  %v435_v43 = vpop.f32.mrb[1].mxu1 }
 0x1d8   : > { %443 = vst.msk [vmem:[%s199_s8] sm:$0xff] %vm442_vm1, %v434_v42 }
 0x1d9   : > { %v438_v44 = vpop.f32.mrb[2].mxu1 }
 0x1da   : > { %v439_v45 = vadd.f32 %v438_v44, %v359_v40  ;;  %v440_v46 = vpop.f32.mrb[3].mxu1 }
 0x1dc   : > { %444 = vst.msk [vmem:[%s199_s8 + $0x8] sm:$0xff] %vm442_vm1, %v439_v45 }
 0x1dd PF: > { %s14_s15 = sadd.s32 1, %s592_s15  }
 0x1de   : > { %p11_p4 = scmp.ge.s32.totalorder %s14_s15, 5  }
 0x1e0   :  { %13 = sbr.rel (!%p11_p4) target bundleno = 1 (0x1), region = 66 }

// kernel: tpu_custom_call.1
= control target key start
LH: loop header
LB: loop body
LE: loop exit
PB: predicated region body
PF: predicated region fallthrough
CT: control target
= control target key end

     0   :  { %s621_s15 = smov 0   ;;  %s819_s0 = inlined_call_operand.vmem [shape: f32[48,128], index: 0, kind: input, shape index: {}]   ;;  %s820_s1 = inlined_call_operand.vmem [shape: f32[128,160], index: 1, kind: input, shape index: {}]   ;;  %s821_s2 = inlined_call_operand.vmem [shape: f32[160,10], index: 2, kind: input, shape index: {}]   ;;  %s822_s3 = inlined_call_operand.vmem [shape: f32[2,160], index: 3, kind: input, shape index: {}]   ;;  %s823_s4 = inlined_call_operand.vmem [shape: f32[48,10], index: 4, kind: output, shape index: {}]  }
   0x1 LB: > { %s501_s16 = sadd.s32 4294967295, %s592_s15   ;;  %p505_p0 = scmp.ge.s32.totalorder %s592_s15, 1  ;;  %s592_s15 = sphi %s621_s15, %s14_s15  }
   0x2   : > { %p163_p1 = scmp.lt.s32.totalorder %s592_s15, 4 }
   0x4   : > { %p164_p2 = pnand %p505_p0, %p163_p1 }
   0x5   : > { %v205_v0 = vld [vmem:[%s820_s1 + $0x8] sm:$0xff] (!%p164_p2)  ;;  %v207_v1 = vld [vmem:[%s820_s1 + $0x18] sm:$0xff] (!%p164_p2)  ;;  %v204_v2 = vld [vmem:[%s820_s1] sm:$0xff] (!%p164_p2)  ;;  %v594_v7 = vmov (!%p164_p2), 0.0   ;;  %v595_v8 = vmov (!%p164_p2), 0.0|0.0   ;;  %s506_s21 = sshll.u32 (!%p164_p2), %s501_s16, 1 }
   0x6   : > { %167 = sbr.rel (%p164_p2) target bundleno = 477 (0x1dd), region = 36  ;;  %v514_v3 = vpack.c.bf16 (!%p164_p2), %v207_v1, %v205_v0  ;;  %v206_v4 = vld [vmem:[%s820_s1 + $0x10] sm:$0xff] (!%p164_p2)  ;;  %v209_v5 = vld [vmem:[%s820_s1 + $0x28] sm:$0xff] (!%p164_p2)  ;;  %v211_v6 = vld [vmem:[%s820_s1 + $0x38] sm:$0xff] (!%p164_p2)  ;;  %319 = vmatprep.mubr.f32.mxu0 (!%p164_p2), %v594_v7  ;;  %546 = vmatprep.subr.bf16.mxu1 (!%p164_p2), %v595_v8  ;;  %p190_p3 = scmp.lt.s32.totalorder (!%p164_p2), %s506_s21, 5  ;;  %vm360_vm0 = vcmask (!%p164_p2), 261120  }
   0x7   : > { %v516_v9 = vpack.c.bf16 (!%p164_p2), %v206_v4, %v204_v2  ;;  %v518_v10 = vpack.c.bf16 (!%p164_p2), %v211_v6, %v209_v5  ;;  %v208_v11 = vld [vmem:[%s820_s1 + $0x20] sm:$0xff] (!%p164_p2)  ;;  %v210_v12 = vld [vmem:[%s820_s1 + $0x30] sm:$0xff] (!%p164_p2)  ;;  %v213_v13 = vld [vmem:[%s820_s1 + $0x48] sm:$0xff] (!%p164_p2)  ;;  %vm442_vm1 = vcmask (!%p164_p2), 80896  }
   0x8   : > { %515 = vmatprep.subr.bf16.mxu0 (!%p164_p2), %v514_v3  ;;  %v215_v14 = vld [vmem:[%s820_s1 + $0x58] sm:$0xff] (!%p164_p2)  ;;  %v520_v15 = vpack.c.bf16 (!%p164_p2), %v210_v12, %v208_v11  ;;  %v212_v17 = vld [vmem:[%s820_s1 + $0x40] sm:$0xff] (!%p164_p2)  ;;  %v214_v18 = vld [vmem:[%s820_s1 + $0x50] sm:$0xff] (!%p164_p2) }
   0x9   : > { %517 = vmatpush1.bf16.msra.mxu0 (!%p164_p2), %v516_v9  ;;  %v522_v16 = vpack.c.bf16 (!%p164_p2), %v215_v14, %v213_v13  ;;  %v217_v19 = vld [vmem:[%s820_s1 + $0x68] sm:$0xff] (!%p164_p2)  ;;  %v219_v20 = vld [vmem:[%s820_s1 + $0x78] sm:$0xff] (!%p164_p2)  ;;  %v524_v21 = vpack.c.bf16 (!%p164_p2), %v214_v18, %v212_v17  ;;  %v216_v23 = vld [vmem:[%s820_s1 + $0x60] sm:$0xff] (!%p164_p2) }
   0xa   : > { %519 = vmatprep.subr.bf16.mxu0 (!%p164_p2), %v518_v10  ;;  %v526_v22 = vpack.c.bf16 (!%p164_p2), %v219_v20, %v217_v19  ;;  %v218_v24 = vld [vmem:[%s820_s1 + $0x70] sm:$0xff] (!%p164_p2)  ;;  %v221_v25 = vld [vmem:[%s820_s1 + $0x88] sm:$0xff] (!%p164_p2)  ;;  %v223_v26 = vld [vmem:[%s820_s1 + $0x98] sm:$0xff] (!%p164_p2)  ;;  %v237_v19 = vlaneseq (!%p164_p2) }
   0xb   : > { %v336_v27 = vld [vmem:[%s821_s2] sm:$0xff] (!%p164_p2)  ;;  %v337_v28 = vld [vmem:[%s821_s2 + $0x8] sm:$0xff] (!%p164_p2)  ;;  %v528_v29 = vpack.c.bf16 (!%p164_p2), %v218_v24, %v216_v23  ;;  %v338_v31 = vld [vmem:[%s821_s2 + $0x10] sm:$0xff] (!%p164_p2)  ;;  %v530_v33 = vpack.c.bf16 (!%p164_p2), %v223_v26, %v221_v25 }
   0xc   : > { %v547_v30 = vpack.c.bf16 (!%p164_p2), %v337_v28, %v336_v27  ;;  %v339_v32 = vld [vmem:[%s821_s2 + $0x18] sm:$0xff] (!%p164_p2)  ;;  %v220_v34 = vld [vmem:[%s820_s1 + $0x80] sm:$0xff] (!%p164_p2)  ;;  %v222_v35 = vld [vmem:[%s820_s1 + $0x90] sm:$0xff] (!%p164_p2)  ;;  %v238_v20 = vshrl.u32 (!%p164_p2), %v237_v19, 7 }
   0xd   : > { %521 = vmatpush1.bf16.msra.mxu0 %v520_v15  ;;  %v225_v36 = vld [vmem:[%s820_s1 + $0xa8] sm:$0xff]  ;;  %v227_v37 = vld [vmem:[%s820_s1 + $0xb8] sm:$0xff]  ;;  %v550_v38 = vpack.c.bf16 %v339_v32, %v338_v31  ;;  %v340_v39 = vld [vmem:[%s821_s2 + $0x20] sm:$0xff]  ;;  %v532_v41 = vpack.c.bf16 %v222_v35, %v220_v34  ;;  %s825_s21 = smov (!%p190_p3, %s506_s21), 5 }
   0xe   : > { %523 = vmatprep.subr.bf16.mxu0 %v522_v16  ;;  %548 = vmatpush1.bf16.msra.mxu1 %v547_v30  ;;  %v341_v40 = vld [vmem:[%s821_s2 + $0x28] sm:$0xff]  ;;  %v534_v42 = vpack.c.bf16 %v227_v37, %v225_v36  ;;  %v224_v43 = vld [vmem:[%s820_s1 + $0xa0] sm:$0xff]  ;;  %v226_v44 = vld [vmem:[%s820_s1 + $0xb0] sm:$0xff]  ;;  %s507_s29 = sshll.u32 %s825_s21, 3  ;;  %v243_v23 = vsub.s32 2, %v238_v20 }
   0xf   : > { %549 = vmatprep.subr.bf16.mxu1 %v595_v8  ;;  %v229_v45 = vld [vmem:[%s820_s1 + $0xc8] sm:$0xff]  ;;  %v231_v46 = vld [vmem:[%s820_s1 + $0xd8] sm:$0xff]  ;;  %v553_v47 = vpack.c.bf16 %v341_v40, %v340_v39  ;;  %v342_v48 = vld [vmem:[%s821_s2 + $0x30] sm:$0xff]  ;;  %v536_v50 = vpack.c.bf16 %v226_v44, %v224_v43  ;;  %s193_s10 = scalar_lea.vmem %s819_s0, %s507_s29  ;;  %v358_v39 = vsub.s32 1, %v238_v20  ;;  %s199_s8 = scalar_lea.vmem %s823_s4, %s507_s29 }
  0x10   : > { %v343_v49 = vld [vmem:[%s821_s2 + $0x38] sm:$0xff]  ;;  %v538_v51 = vpack.c.bf16 %v231_v46, %v229_v45  ;;  %v228_v52 = vld [vmem:[%s820_s1 + $0xc0] sm:$0xff]  ;;  %v230_v53 = vld [vmem:[%s820_s1 + $0xd0] sm:$0xff] }
  0x11   : > { %525 = vmatpush1.bf16.msra.mxu0 %v524_v21  ;;  %v233_v54 = vld [vmem:[%s820_s1 + $0xe8] sm:$0xff]  ;;  %v235_v55 = vld [vmem:[%s820_s1 + $0xf8] sm:$0xff]  ;;  %v556_v56 = vpack.c.bf16 %v343_v49, %v342_v48  ;;  %v344_v57 = vld [vmem:[%s821_s2 + $0x40] sm:$0xff]  ;;  %v540_v59 = vpack.c.bf16 %v230_v53, %v228_v52  ;;  %v239_v21 = vsub.s32 0, %v238_v20 }
  0x12   : > { %527 = vmatprep.subr.bf16.mxu0 %v526_v22  ;;  %551 = vmatpush1.bf16.msra.mxu1 %v550_v38  ;;  %v345_v58 = vld [vmem:[%s821_s2 + $0x48] sm:$0xff]  ;;  %v542_v60 = vpack.c.bf16 %v235_v55, %v233_v54  ;;  %v232_v61 = vld [vmem:[%s820_s1 + $0xe0] sm:$0xff]  ;;  %v234_v62 = vld [vmem:[%s820_s1 + $0xf0] sm:$0xff] }
  0x13   : > { %552 = vmatprep.subr.bf16.mxu1 %v595_v8  ;;  %v559_v63 = vpack.c.bf16 %v345_v58, %v344_v57  ;;  %v346_v0 = vld [vmem:[%s821_s2 + $0x50] sm:$0xff]  ;;  %v347_v1 = vld [vmem:[%s821_s2 + $0x58] sm:$0xff]  ;;  %v544_v2 = vpack.c.bf16 %v234_v62, %v232_v61  ;;  %v348_v4 = vld [vmem:[%s821_s2 + $0x60] sm:$0xff] }
  0x14   : > { %v562_v3 = vpack.c.bf16 %v347_v1, %v346_v0  ;;  %v349_v5 = vld [vmem:[%s821_s2 + $0x68] sm:$0xff]  ;;  %v202_v6 = vld [vmem:[%s193_s10] sm:$0xff]  ;;  %v350_v10 = vld [vmem:[%s821_s2 + $0x70] sm:$0xff] }
  0x15   : > { %529 = vmatpush1.bf16.msra.mxu0 %v528_v29  ;;  %v565_v9 = vpack.c.bf16 %v349_v5, %v348_v4  ;;  %v351_v11 = vld [vmem:[%s821_s2 + $0x78] sm:$0xff]  ;;  %v203_v12 = vld [vmem:[%s193_s10 + $0x8] sm:$0xff]  ;;  %v352_v14 = vld [vmem:[%s821_s2 + $0x80] sm:$0xff] }
  0x16   : > { %531 = vmatprep.subr.bf16.mxu0 %v530_v33  ;;  %554 = vmatpush1.bf16.msra.mxu1 %v553_v47  ;;  %v568_v13 = vpack.c.bf16 %v351_v11, %v350_v10  ;;  %v353_v15 = vld [vmem:[%s821_s2 + $0x88] sm:$0xff]  ;;  %v355_v17 = vld [vmem:[%s821_s2 + $0x98] sm:$0xff]  ;;  %v201_v22 = vld [vmem:[%s822_s3] sm:$0xf] }
  0x17   : > { %555 = vmatprep.subr.bf16.mxu1 %v595_v8  ;;  %v571_v16 = vpack.c.bf16 %v353_v15, %v352_v14  ;;  %v240_v24 = vrot.slane %v201_v22, %v239_v21  ;;  %v359_v40 = vrot.slane %v201_v22, %v358_v39 }
  0x19   : > { %533 = vmatpush1.bf16.msra.mxu0 %v532_v41  ;;  %v250_v25 = vrot.slane %v240_v24, %v239_v21 }
  0x1a   : > { %535 = vmatprep.subr.bf16.mxu0 %v534_v42  ;;  %557 = vmatpush1.bf16.msra.mxu1 %v556_v56 }
  0x1b   : > { %558 = vmatprep.subr.bf16.mxu1 %v595_v8 }
  0x1d   : > { %537 = vmatpush1.bf16.msra.mxu0 %v536_v50 }
  0x1e   : > { %539 = vmatprep.subr.bf16.mxu0 %v538_v51  ;;  %560 = vmatpush1.bf16.msra.mxu1 %v559_v63 }
  0x1f   : > { %561 = vmatprep.subr.bf16.mxu1 %v595_v8 }
  0x21   : > { %541 = vmatpush1.bf16.msra.mxu0 %v540_v59 }
  0x22   : > { %543 = vmatprep.subr.bf16.mxu0 %v542_v60  ;;  %563 = vmatpush1.bf16.msra.mxu1 %v562_v3 }
  0x23   : > { %564 = vmatprep.subr.bf16.mxu1 %v595_v8 }
  0x25   : > { %545 = vmatpush1.bf16.msra.mxu0 %v544_v2 }
  0x26   : > { %566 = vmatpush1.bf16.msra.mxu1 %v565_v9 }
  0x27   : > { %567 = vmatprep.subr.bf16.mxu1 %v595_v8 }
  0x28   : > { %320 = vmatmul.mubr.f32.vlgmr.msra.gmra.mrb[0].mxu0 %v202_v6 }
  0x29   : > { %325 = vmatprep.mubr.f32.mxu0 %v594_v7  ;;  %v354_v7 = vld [vmem:[%s821_s2 + $0x90] sm:$0xff] }
  0x2a   : > { %569 = vmatpush1.bf16.msra.mxu1 %v568_v13  ;;  %v574_v18 = vpack.c.bf16 %v355_v17, %v354_v7 }
  0x2b   : > { %570 = vmatprep.subr.bf16.mxu1 %v595_v8 }
  0x2c   : > { %326 = vmatmul.mubr.f32.gmra.mrb[2].mxu0 %v203_v12 }
  0x2e   : > { %572 = vmatpush1.bf16.msra.mxu1 %v571_v16 }
  0x2f   : > { %573 = vmatprep.subr.bf16.mxu1 %v595_v8  ;;  %v244_v8 = vrot.slane %v201_v22, %v243_v23 }
  0x31   : > { %v254_v26 = vrot.slane %v244_v8, %v239_v21 }
  0x32   : > { %575 = vmatpush1.bf16.msra.mxu1 %v574_v18 }
  0xfb   : > { %v321_v27 = vpop.f32.mrb[0].mxu0 }
  0xfc   : > { %v322_v28 = vadd.f32 %v321_v27, %v250_v25  ;;  %v323_v29 = vpop.f32.mrb[1].mxu0 }
  0xfd   : > { %v324_v30 = vadd.f32 %v323_v29, %v254_v26 }
  0xfe   : > { %v332_v33 = vmax.f32 %v322_v28, 0.0 }
  0xff   : > { %v333_v31 = vmax.f32 %v324_v30, 0.0  ;;  %v327_v32 = vpop.f32.mrb[2].mxu0 }
 0x100   : > { %v328_v34 = vadd.f32 %v327_v32, %v250_v25  ;;  %v329_v35 = vpop.f32.mrb[3].mxu0 }
 0x101   : > { %v330_v36 = vadd.f32 %v329_v35, %v254_v26  ;;  %510 = vmatprep.mubr.msk.f32.mxu1 %vm360_vm0, %v333_v31 }
 0x102   : > { %432 = vmatmul.mubr.f32.vlgmr.msra.gmra.mrb[0].mxu1 %v332_v33  ;;  %v334_v38 = vmax.f32 %v328_v34, 0.0 }
 0x103   : > { %v335_v37 = vmax.f32 %v330_v36, 0.0 }
 0x105   : > { %511 = vmatprep.mubr.msk.f32.mxu1 %vm360_vm0, %v335_v37 }
 0x106   : > { %437 = vmatmul.mubr.f32.gmra.mrb[2].mxu1 %v334_v38 }
 0x1d5   : > { %v433_v41 = vpop.f32.mrb[0].mxu1 }
 0x1d6   : > { %v434_v42 = vadd.f32 %v433_v41, %v359_v40  ;;  %v435_v43 = vpop.f32.mrb[1].mxu1 }
 0x1d8   : > { %443 = vst.msk [vmem:[%s199_s8] sm:$0xff] %vm442_vm1, %v434_v42 }
 0x1d9   : > { %v438_v44 = vpop.f32.mrb[2].mxu1 }
 0x1da   : > { %v439_v45 = vadd.f32 %v438_v44, %v359_v40  ;;  %v440_v46 = vpop.f32.mrb[3].mxu1 }
 0x1dc   : > { %444 = vst.msk [vmem:[%s199_s8 + $0x8] sm:$0xff] %vm442_vm1, %v439_v45 }
 0x1dd PF: > { %s14_s15 = sadd.s32 1, %s592_s15  }
 0x1de   : > { %p11_p4 = scmp.ge.s32.totalorder %s14_s15, 5  }
 0x1e0   :  { %13 = sbr.rel (!%p11_p4) target bundleno = 1 (0x1), region = 66 }

</bundles_post_ra>
